<compile_context>
chip_gen: v7x
topology: tpu7x:2x2x1
jax: 0.10.0
libtpu: 0.0.40
codegen_flags: <defaults>
</compile_context>

<pallas_src>
import jax
import jax.numpy as jnp
from jax.experimental import pallas as pl
from jax.experimental.pallas import tpu as pltpu


def _sublane_mult(dtype):
    """Sublane quantum for the second-to-last block dim: 8/16/32 for 32/16/8-bit."""
    return max(8, 32 // jnp.dtype(dtype).itemsize)


def _largest_divisor_multiple(total, mult, cap):
    """Largest divisor of `total` that is a multiple of `mult` and <= cap, else None."""
    best = None
    d = mult
    stop = min(total, cap)
    while d <= stop:
        if total % d == 0:
            best = d
        d += mult
    return best


def _flat_kernel(x_ref, s_ref, o_ref):
    # x_ref: (1, THW, TC)  spatial on sublanes, channels on lanes
    # s_ref: (TC, 1)       per-channel scale, column (broadcast across lanes)
    # o_ref: (1, TC, THW)  channels on sublanes, flattened spatial on lanes
    xt = x_ref[0].T                                    # XLU 2-D minor transpose
    o_ref[0] = (xt * s_ref[...]).astype(o_ref.dtype)   # VPU mul right on the store path


def _make_nhwc_kernel(th):
    def kernel(x_ref, s_ref, o_ref):
        # x_ref: (1, TH, W, TC); s_ref: (TC, 1); o_ref: (1, TC, TH, W)
        s = s_ref[...]
        for i in range(th):                            # static unroll; TH <= 64 by construction
            o_ref[0, :, i, :] = (x_ref[0, i, :, :].T * s).astype(o_ref.dtype)
    return kernel


def permute_mul(x_nhwc, layer_scale, *, block_budget_bytes=2 * 1024 * 1024):
    """x_nhwc: (N, H, W, C); layer_scale: (C, 1, 1) -> (N, C, H, W) scaled."""
    N, H, W, C = x_nhwc.shape
    HW = H * W
    out_dtype = jnp.promote_types(x_nhwc.dtype, layer_scale.dtype)
    itemsize = max(jnp.dtype(x_nhwc.dtype).itemsize, jnp.dtype(out_dtype).itemsize)
    sub_in = _sublane_mult(x_nhwc.dtype)
    sub_out = _sublane_mult(out_dtype)

    scale_col = layer_scale.reshape(C, 1)
    params = pltpu.CompilerParams(
        dimension_semantics=("parallel", "parallel", "parallel"))

    # ---- channel tile -----------------------------------------------------
    if C % 128 != 0:
        tc = C
    else:
        tc = 128
        if C != 128:
            # Contiguous-read variant (TC == C): use it only if the remaining
            # grid axes still provide >= 2 independent steps (v7x megacore)
            # and the full-C block respects the VMEM budget.
            cap_c = (block_budget_bytes // (C * itemsize)) // 128 * 128
            thw_c = _largest_divisor_multiple(HW, 128, cap_c) if cap_c >= 128 else None
            if thw_c is not None:
                n_spatial = HW // thw_c
            elif HW * C * itemsize <= block_budget_bytes:
                n_spatial = 1
            else:
                n_spatial = 0
            if n_spatial > 0 and N * n_spatial >= 2:
                tc = C

    # ---- path A: flat (N, HW, C) -> lane-dense (N, C, HW) ------------------
    cap_hw = (block_budget_bytes // (tc * itemsize)) // 128 * 128
    thw = _largest_divisor_multiple(HW, 128, cap_hw) if cap_hw >= 128 else None
    if thw is None and HW * tc * itemsize <= block_budget_bytes:
        thw = HW  # full-dim block: exempt from the 128-lane multiple rule

    if thw is not None:
        x_flat = x_nhwc.reshape(N, HW, C)              # free: contiguous collapse of H, W
        out_flat = pl.pallas_call(
            _flat_kernel,
            out_shape=jax.ShapeDtypeStruct((N, C, HW), out_dtype),
            grid=(N, C // tc, HW // thw),
            in_specs=[
                pl.BlockSpec((1, thw, tc), lambda n, c, p: (n, p, c)),
                pl.BlockSpec((tc, 1), lambda n, c, p: (c, 0)),   # channel-only index: resident
            ],
            out_specs=pl.BlockSpec((1, tc, thw), lambda n, c, p: (n, c, p)),
            compiler_params=params,
        )(x_flat, scale_col)
        return out_flat.reshape(N, C, H, W)            # free reshape back to NCHW

    # ---- path B: 4-D fallback (large HW with no 128-multiple divisor) ------
    # Output tiled (1, TC, TH, W): TH a multiple of the sublane quantum, W kept
    # full (masked-width stores); keeps blocks under the VMEM budget instead of
    # one giant full-HW block.
    sub = max(sub_in, sub_out)
    cap_th = max(sub, min(64, block_budget_bytes // max(1, W * tc * itemsize)))
    th = _largest_divisor_multiple(H, sub, cap_th)
    if th is not None:
        grid_h = H // th
    elif H <= cap_th:
        th, grid_h = H, 1                              # full-H block (full-dim exempt)
    else:
        # TODO(synk): last-resort remainder path relies on Pallas padding/masking
        # of non-divisible trailing blocks (input garbage rows are never written back).
        th = max(sub, (cap_th // sub) * sub)
        grid_h = pl.cdiv(H, th)

    out = pl.pallas_call(
        _make_nhwc_kernel(th),
        out_shape=jax.ShapeDtypeStruct((N, C, H, W), out_dtype),
        grid=(N, C // tc, grid_h),
        in_specs=[
            pl.BlockSpec((1, th, W, tc), lambda n, c, h: (n, h, 0, c)),
            pl.BlockSpec((tc, 1), lambda n, c, h: (c, 0)),
        ],
        out_specs=pl.BlockSpec((1, tc, th, W), lambda n, c, h: (n, c, h, 0)),
        compiler_params=params,
    )(x_nhwc, scale_col)
    return out


def _reference(x_nhwc, layer_scale):
    C = layer_scale.shape[0]
    return jnp.transpose(x_nhwc, (0, 3, 1, 2)) * layer_scale.reshape(1, C, 1, 1)


if __name__ == "__main__":
    key = jax.random.PRNGKey(0)
    kx1, kx2, kx3, ks = jax.random.split(key, 4)

    C = 384
    layer_scale3 = jax.random.uniform(ks, (C, 1, 1), dtype=jnp.float32)   # ~torch.rand

    # 1) Exact module shape: (1, 28, 28, 384) -> flat path, TC=128 (3 channel
    #    tiles so both v7x cores get work), full-HW spatial block.
    x52 = jax.random.normal(kx1, (1, 28, 28, C), dtype=jnp.float32)        # ~torch.randn
    out1 = jax.block_until_ready(permute_mul(x52, layer_scale3))
    ref1 = _reference(x52, layer_scale3)
    assert out1.shape == (1, C, 28, 28)
    assert jnp.allclose(out1, ref1, atol=1e-6, rtol=1e-6)

    # 2) Batched shape with HW a multiple of 128 -> flat path, TC=C (contiguous
    #    input DMAs for v5e) while N=2 keeps two parallel grid steps for v7x.
    xb = jax.random.normal(kx2, (2, 16, 16, C), dtype=jnp.float32)
    out2 = jax.block_until_ready(permute_mul(xb, layer_scale3))
    ref2 = _reference(xb, layer_scale3)
    assert out2.shape == (2, C, 16, 16)
    assert jnp.allclose(out2, ref2, atol=1e-6, rtol=1e-6)

    # 3) bf16 input (likely production dtype): dtype-aware tiling + cast on store.
    xbf = jax.random.normal(kx2, (2, 16, 16, C), dtype=jnp.bfloat16)
    out3 = jax.block_until_ready(permute_mul(xbf, layer_scale3))
    ref3 = _reference(xbf, layer_scale3)
    assert out3.shape == (2, C, 16, 16) and out3.dtype == jnp.float32
    assert jnp.allclose(out3, ref3, atol=1e-5, rtol=1e-5)

    # 4) 4-D fallback path (HW not a 128-multiple + tight VMEM budget): verifies
    #    the bounded-block fallback instead of one giant full-HW block.
    xc = jax.random.normal(kx3, (1, 24, 20, C), dtype=jnp.float32)
    out4 = jax.block_until_ready(permute_mul(xc, layer_scale3,
                                             block_budget_bytes=128 * 1024))
    ref4 = _reference(xc, layer_scale3)
    assert out4.shape == (1, C, 24, 20)
    assert jnp.allclose(out4, ref4, atol=1e-6, rtol=1e-6)

    print("KERNEL_OK")
</pallas_src>

<mosaic_0001>
module attributes {stable_mosaic.version = 11 : i64} {
  func.func @_flat_kernel(%arg0: i32, %arg1: i32, %arg2: i32, %arg3: memref<1x784x128xf32, #tpu.memory_space<vmem>>, %arg4: memref<128x1xf32, #tpu.memory_space<vmem>>, %arg5: memref<1x128x784xf32, #tpu.memory_space<vmem>>) attributes {dimension_semantics = [#tpu.dimension_semantics<parallel>, #tpu.dimension_semantics<parallel>, #tpu.dimension_semantics<parallel>], iteration_bounds = array<i64: 1, 3, 1>, scalar_prefetch = 0 : i64, scratch_operands = 0 : i64, tpu.core_type = #tpu.core_type<tc>, window_params = [{transform_indices = @transform_0, window_bounds = array<i64: 1, 784, 128>}, {transform_indices = @transform_1, window_bounds = array<i64: 128, 1>}, {transform_indices = @transform_2, window_bounds = array<i64: 1, 128, 784>}]} {
    %c0 = arith.constant 0 : index
    %c0_0 = arith.constant 0 : index
    %c0_1 = arith.constant 0 : index
    %0 = vector.load %arg3[%c0, %c0_0, %c0_1] : memref<1x784x128xf32, #tpu.memory_space<vmem>>, vector<1x784x128xf32>
    %1 = vector.shape_cast %0 : vector<1x784x128xf32> to vector<784x128xf32>
    %2 = tpu.transpose %1, [1, 0] : vector<784x128xf32> -> vector<128x784xf32>
    %c0_2 = arith.constant 0 : index
    %c0_3 = arith.constant 0 : index
    %3 = vector.load %arg4[%c0_2, %c0_3] : memref<128x1xf32, #tpu.memory_space<vmem>>, vector<128x1xf32>
    %4 = vector.broadcast %3 : vector<128x1xf32> to vector<128x784xf32>
    %5 = arith.mulf %2, %4 : vector<128x784xf32>
    %c0_4 = arith.constant 0 : index
    %c0_5 = arith.constant 0 : index
    %c0_6 = arith.constant 0 : index
    %6 = vector.load %arg5[%c0_4, %c0_5, %c0_6] : memref<1x128x784xf32, #tpu.memory_space<vmem>>, vector<1x128x784xf32>
    %7 = vector.shape_cast %6 : vector<1x128x784xf32> to vector<128x784xf32>
    %8 = vector.shape_cast %5 : vector<128x784xf32> to vector<1x128x784xf32>
    tpu.vector_store %arg5[%c0_4, %c0_5, %c0_6], %8 {strides = array<i32>} : memref<1x128x784xf32, #tpu.memory_space<vmem>>, vector<1x128x784xf32>,
    return
  }
  func.func @transform_0(%arg0: i32, %arg1: i32, %arg2: i32) -> (i32, i32, i32) {
    %c0_i32 = arith.constant 0 : i32
    return %arg0, %arg2, %arg1 : i32, i32, i32
  }
  func.func @transform_1(%arg0: i32, %arg1: i32, %arg2: i32) -> (i32, i32) {
    %c0_i32 = arith.constant 0 : i32
    %c0_i32_0 = arith.constant 0 : i32
    return %arg1, %c0_i32 : i32, i32
  }
  func.func @transform_2(%arg0: i32, %arg1: i32, %arg2: i32) -> (i32, i32, i32) {
    %c0_i32 = arith.constant 0 : i32
    return %arg0, %arg1, %arg2 : i32, i32, i32
  }
}

</mosaic_0001>

<bundles_post_ra>
// kernel: tpu_custom_call.1
= control target key start
LH: loop header
LB: loop body
LE: loop exit
PB: predicated region body
PF: predicated region fallthrough
CT: control target
= control target key end

     0   :  { %7 = vsyncpa [#allocation3], 0  ;;  %s1861_s0 = inlined_call_operand.hbm [shape: f32[1,784,384], index: 0, kind: input, shape index: {}]   ;;  %s1862_s1 = inlined_call_operand.vmem [shape: f32[384,1], index: 1, kind: input, shape index: {}]   ;;  %s1863_s2 = inlined_call_operand.vmem [shape: f32[1,384,784], index: 2, kind: output, shape index: {}]  }
   0x1   :  { %9 = vsyncpa [#allocation3 + $0x1], 0  ;;  %s1190_s9 = smov 0   ;;  %s1192_s10 = smov 0  }
   0x2   :  { %s1194_s11 = smov 0   ;;  %s1196_s12 = smov 0  }
   0x3   :  { %s1198_s13 = smov 0   ;;  %s1200_s14 = smov 0  }
   0x4 LB: > { %s1011_s15 = sadd.s32 4294967295, %s1168_s14   ;;  %s30_s16 = sadd.s32 1, %s1164_s13  ;;  %s1168_s14 = sphi %s1200_s14, %s15_s14   ;;  %s1164_s13 = sphi %s1198_s13, %s1965_s13   ;;  %s1160_s12 = sphi %s1196_s12, %s1964_s12   ;;  %s1156_s11 = sphi %s1194_s11, %s1963_s11   ;;  %s1152_s10 = sphi %s1192_s10, %s1962_s10   ;;  %s1148_s9 = sphi %s1190_s9, %s1961_s9  }
   0x5   : > { %p32_p0 = scmp.ge.s32.totalorder %s30_s16, 3  ;;  %s45_s17 = sadd.s32 1, %s1156_s11 }
   0x6   : > { %p52_p1 = scmp.ne.s32.totalorder %s1156_s11, %s1152_s10  ;;  %p53_p2 = scmp.eq.s32.totalorder %s1168_s14, 0 }
   0x7   : > { %s1967_s16 = smov (%p32_p0, %s30_s16), 0  ;;  %p58_p4 = scmp.ne.s32.totalorder %s1152_s10, %s1148_s9 }
   0x8   : > { %p54_p3 = por %p53_p2, %p52_p1  ;;  %s41_s18 = ssub.s32 %s1164_s13, %s1967_s16 }
   0x9   : > { %p59_p5 = scmp.eq.s32.totalorder %s1011_s15, 0  ;;  %p43_p6 = scmp.eq.s32.totalorder %s41_s18, 0 }
   0xa   : > { %p1032_p8 = scmp.lt.s32.totalorder %s1168_s14, 3  ;;  %s138_s21 = sand.u32 1, %s1156_s11  }
   0xb   : > { %p1229_p7 = por %p59_p5, %p58_p4  ;;  %s1015_s22 = sshll.u32 %s1164_s13, 7 }
   0xc   : > { %s1235_s20 = scalar_select %p43_p6, %s1156_s11, %s45_s17  }
   0xd   : > { %s1023_s23 = smul.u32 784, %s138_s21  ;;  %s1242_s26 = scalar_lea.hbm %s1861_s0, %s1015_s22 }
   0xe   : > { %p1244_p9 = pnand %p1032_p8, %p54_p3  ;;  %s1251_s30 = scalar_lea.sflag [#allocation3], %s138_s21 }
   0xf   : > { %s142_s28 = scalar_lea.vmem [#allocation2], %s1023_s23  ;;  %s1088_s3 = scalar_lea.hbm %s1242_s26, 12544 }
  0x10   : > { %s153_s29 = sshll.u32 %s142_s28, 4  ;;  %p1089_p11 = scmp.ne.s32.totalorder %s1242_s26, %s1088_s3  ;;  %s1248_s29 = int_to_ptr.vmem [resolvable:$true] %s153_s29 }
  0x11   : > { %p1090_p12 = pneg %p1244_p9  ;;  %s1093_s6 = scalar_lea.hbm %s1861_s0, 37632 }
  0x12   : > { %p1094_p1 = scmp.lt.u32.totalorder %s1242_s26, %s1861_s0  ;;  %p1095_p2 = scmp.lt.u32.totalorder %s1093_s6, %s1088_s3 }
  0x13   : > { %p1091_p13 = pnand %p1090_p12, %p1089_p11  ;;  %p1097_p4 = scmp.lt.u32.totalorder %s1088_s3, %s1242_s26 }
  0x14   : > { %p1096_p3 = por %p1095_p2, %p1094_p1 }
  0x15   : > { %p1092_p0 = pneg %p1091_p13 }
  0x16   : > { %p1098_p5 = por %p1097_p4, %p1096_p3 }
  0x18   : > { %p1099_p6 = pnand %p1098_p5, %p1092_p0 }
  0x1a   : > { %1102 = shalt.err (!%p1099_p6)
}
  0x1b   : > { %s1103_s9 = scalar_lea.vmem %s1248_s29, 12544  ;;  %s1170_s15 = smov [#allocation2]  }
  0x1c   : > { %p1104_p8 = scmp.ne.s32.totalorder %s1248_s29, %s1103_s9  ;;  %s1108_s17 = sshll.u32 %s1170_s15, 4  ;;  %s1109_s17 = int_to_ptr.vmem [resolvable:$false] %s1108_s17 }
  0x1d   : > { %s1110_s18 = scalar_lea.vmem %s1109_s17, 25088  ;;  %p1111_p10 = scmp.lt.s32.totalorder %s1248_s29, %s1109_s17 }
  0x1e   : > { %p1106_p11 = pnand %p1104_p8, %p1090_p12  ;;  %p1112_p1 = scmp.lt.s32.totalorder %s1110_s18, %s1103_s9 }
  0x20   : > { %p1107_p13 = pneg %p1106_p11  ;;  %p1113_p2 = por %p1112_p1, %p1111_p10 }
  0x22   : > { %p1114_p3 = pnand %p1113_p2, %p1107_p13 }
  0x24   : > { %1117 = shalt.err (!%p1114_p3)
}
  0x25   : > { %s1171_s21 = smov 384   ;;  %s1172_s22 = smov 128  }
  0x26   : > { %s1173_s23 = smov 8   ;;  %p170_p12 = scmp.lt.s32.totalorder %s1168_s14, 4 }
  0x27   : > { %1031 = dma.hbm_to_vmem [thread:$0]  (!%p1244_p9), %s1242_s26, 12544, %s1248_s29, %s1251_s30, %s1171_s21, %s1172_s22, %s1173_s23  }
  0x28   : > { %p1866_p0 = scmp.ge.s32.totalorder %s1168_s14, 1 }
  0x2a   : > { %p171_p4 = pnand %p1866_p0, %p170_p12 }
  0x2c   : > { %174 = sbr.rel (%p171_p4) target bundleno = 485 (0x1e5), region = 28 }
  0x33   : > { %s176_s24 = sand.u32 1, %s1152_s10  }
  0x34   : > { %s1024_s25 = smul.u32 784, %s176_s24  ;;  %s177_s28 = scalar_lea.sflag [#allocation3], %s176_s24 }
  0x36   : > { %s1283_s3 = scalar_lea.vmem [#allocation2], %s1024_s25 }
  0x37   : > { %1143 = dma.done.wait (%p1229_p7), %s177_s28, 12544  }
  0x38   : > { %1145 = vsyncadd (%p1229_p7), %s177_s28, 4294954752  ;;  %v254_v0 = vld [vmem:[%s1283_s3 + $0x80] sm:$0xff]  ;;  %v255_v2 = vld [vmem:[%s1283_s3 + $0x88] sm:$0xff]  ;;  %s1017_s19 = sshll.u32 %s1160_s12, 4  ;;  %vm774_vm0 = vcmask 130048  }
  0x39   : > { %v238_v1 = vld [vmem:[%s1283_s3] sm:$0xff]  ;;  %368 = vxpose.xlu1.b32.start [1/16] %v254_v0, 128  ;;  %v239_v3 = vld [vmem:[%s1283_s3 + $0x8] sm:$0xff]  ;;  %v256_v4 = vld [vmem:[%s1283_s3 + $0x90] sm:$0xff]  ;;  %p217_p7 = scmp.lt.s32.totalorder %s1017_s19, 47 }
  0x3a   : > { %336 = vxpose.xlu0.b32.start [1/16] %v238_v1, 128  ;;  %v240_v5 = vld [vmem:[%s1283_s3 + $0x10] sm:$0xff]  ;;  %v257_v6 = vld [vmem:[%s1283_s3 + $0x98] sm:$0xff]  ;;  %v258_v8 = vld [vmem:[%s1283_s3 + $0xa0] sm:$0xff] }
  0x3b   : > { %v241_v7 = vld [vmem:[%s1283_s3 + $0x18] sm:$0xff]  ;;  %v242_v9 = vld [vmem:[%s1283_s3 + $0x20] sm:$0xff]  ;;  %v259_v10 = vld [vmem:[%s1283_s3 + $0xa8] sm:$0xff]  ;;  %s1969_s19 = smov (!%p217_p7, %s1017_s19), 47 }
  0x3c   : > { %v243_v11 = vld [vmem:[%s1283_s3 + $0x28] sm:$0xff]  ;;  %v260_v12 = vld [vmem:[%s1283_s3 + $0xb0] sm:$0xff]  ;;  %v261_v14 = vld [vmem:[%s1283_s3 + $0xb8] sm:$0xff]  ;;  %s1018_s26 = sshll.u32 %s1969_s19, 3  ;;  %s1025_s30 = smul.u32 56, %s1969_s19 }
  0x3d   : > { %369 = vxpose.xlu1.b32.cont [2/16] %v255_v2, 128  ;;  %v244_v13 = vld [vmem:[%s1283_s3 + $0x30] sm:$0xff]  ;;  %v245_v15 = vld [vmem:[%s1283_s3 + $0x38] sm:$0xff]  ;;  %v262_v16 = vld [vmem:[%s1283_s3 + $0xc0] sm:$0xff]  ;;  %s1482_s29 = scalar_lea.vmem %s1862_s1, %s1018_s26 }
  0x3e   : > { %337 = vxpose.xlu0.b32.cont [2/16] %v239_v3, 128  ;;  %v246_v17 = vld [vmem:[%s1283_s3 + $0x40] sm:$0xff]  ;;  %v263_v18 = vld [vmem:[%s1283_s3 + $0xc8] sm:$0xff]  ;;  %v264_v20 = vld [vmem:[%s1283_s3 + $0xd0] sm:$0xff]  ;;  %s1608_s6 = scalar_lea.vmem %s1863_s2, %s1025_s30 }
  0x3f   : > { %v247_v19 = vld [vmem:[%s1283_s3 + $0x48] sm:$0xff]  ;;  %v248_v21 = vld [vmem:[%s1283_s3 + $0x50] sm:$0xff]  ;;  %v265_v22 = vld [vmem:[%s1283_s3 + $0xd8] sm:$0xff] }
  0x40   : > { %v249_v23 = vld [vmem:[%s1283_s3 + $0x58] sm:$0xff]  ;;  %v266_v24 = vld [vmem:[%s1283_s3 + $0xe0] sm:$0xff]  ;;  %v267_v26 = vld [vmem:[%s1283_s3 + $0xe8] sm:$0xff] }
  0x41   : > { %370 = vxpose.xlu1.b32.cont [3/16] %v256_v4, 128  ;;  %v250_v25 = vld [vmem:[%s1283_s3 + $0x60] sm:$0xff]  ;;  %v251_v27 = vld [vmem:[%s1283_s3 + $0x68] sm:$0xff]  ;;  %v268_v28 = vld [vmem:[%s1283_s3 + $0xf0] sm:$0xff] }
  0x42   : > { %338 = vxpose.xlu0.b32.cont [3/16] %v240_v5, 128  ;;  %v252_v29 = vld [vmem:[%s1283_s3 + $0x70] sm:$0xff]  ;;  %v269_v30 = vld [vmem:[%s1283_s3 + $0xf8] sm:$0xff]  ;;  %v286_v32 = vld [vmem:[%s1283_s3 + $0x180] sm:$0xff] }
  0x43   : > { %v253_v31 = vld [vmem:[%s1283_s3 + $0x78] sm:$0xff]  ;;  %v270_v33 = vld [vmem:[%s1283_s3 + $0x100] sm:$0xff]  ;;  %v287_v34 = vld [vmem:[%s1283_s3 + $0x188] sm:$0xff] }
  0x44   : > { %v271_v35 = vld [vmem:[%s1283_s3 + $0x108] sm:$0xff]  ;;  %v288_v36 = vld [vmem:[%s1283_s3 + $0x190] sm:$0xff]  ;;  %v289_v38 = vld [vmem:[%s1283_s3 + $0x198] sm:$0xff] }
  0x45   : > { %371 = vxpose.xlu1.b32.cont [4/16] %v257_v6, 128  ;;  %v272_v37 = vld [vmem:[%s1283_s3 + $0x110] sm:$0xff]  ;;  %v273_v39 = vld [vmem:[%s1283_s3 + $0x118] sm:$0xff]  ;;  %v290_v40 = vld [vmem:[%s1283_s3 + $0x1a0] sm:$0xff] }
  0x46   : > { %339 = vxpose.xlu0.b32.cont [4/16] %v241_v7, 128  ;;  %v274_v41 = vld [vmem:[%s1283_s3 + $0x120] sm:$0xff]  ;;  %v291_v42 = vld [vmem:[%s1283_s3 + $0x1a8] sm:$0xff]  ;;  %v292_v44 = vld [vmem:[%s1283_s3 + $0x1b0] sm:$0xff] }
  0x47   : > { %v275_v43 = vld [vmem:[%s1283_s3 + $0x128] sm:$0xff]  ;;  %v276_v45 = vld [vmem:[%s1283_s3 + $0x130] sm:$0xff]  ;;  %v293_v46 = vld [vmem:[%s1283_s3 + $0x1b8] sm:$0xff] }
  0x48   : > { %v277_v47 = vld [vmem:[%s1283_s3 + $0x138] sm:$0xff]  ;;  %v294_v48 = vld [vmem:[%s1283_s3 + $0x1c0] sm:$0xff]  ;;  %v295_v50 = vld [vmem:[%s1283_s3 + $0x1c8] sm:$0xff] }
  0x49   : > { %372 = vxpose.xlu1.b32.cont [5/16] %v258_v8, 128  ;;  %v278_v49 = vld [vmem:[%s1283_s3 + $0x140] sm:$0xff]  ;;  %v279_v51 = vld [vmem:[%s1283_s3 + $0x148] sm:$0xff]  ;;  %v296_v52 = vld [vmem:[%s1283_s3 + $0x1d0] sm:$0xff] }
  0x4a   : > { %340 = vxpose.xlu0.b32.cont [5/16] %v242_v9, 128  ;;  %v280_v53 = vld [vmem:[%s1283_s3 + $0x150] sm:$0xff]  ;;  %v297_v54 = vld [vmem:[%s1283_s3 + $0x1d8] sm:$0xff]  ;;  %v298_v56 = vld [vmem:[%s1283_s3 + $0x1e0] sm:$0xff] }
  0x4b   : > { %v281_v55 = vld [vmem:[%s1283_s3 + $0x158] sm:$0xff]  ;;  %v282_v57 = vld [vmem:[%s1283_s3 + $0x160] sm:$0xff]  ;;  %v299_v58 = vld [vmem:[%s1283_s3 + $0x1e8] sm:$0xff] }
  0x4c   : > { %v283_v59 = vld [vmem:[%s1283_s3 + $0x168] sm:$0xff]  ;;  %v300_v60 = vld [vmem:[%s1283_s3 + $0x1f0] sm:$0xff]  ;;  %v301_v62 = vld [vmem:[%s1283_s3 + $0x1f8] sm:$0xff] }
  0x4d   : > { %373 = vxpose.xlu1.b32.cont [6/16] %v259_v10, 128  ;;  %v284_v61 = vld [vmem:[%s1283_s3 + $0x170] sm:$0xff]  ;;  %v285_v63 = vld [vmem:[%s1283_s3 + $0x178] sm:$0xff]  ;;  %v318_v0 = vld [vmem:[%s1283_s3 + $0x280] sm:$0xff] }
  0x4e   : > { %341 = vxpose.xlu0.b32.cont [6/16] %v243_v11, 128  ;;  %v302_v1 = vld [vmem:[%s1283_s3 + $0x200] sm:$0xff]  ;;  %v319_v4 = vld [vmem:[%s1283_s3 + $0x288] sm:$0xff]  ;;  %v320_v8 = vld [vmem:[%s1283_s3 + $0x290] sm:$0xff] }
  0x4f   : > { %v303_v5 = vld [vmem:[%s1283_s3 + $0x208] sm:$0xff]  ;;  %v304_v9 = vld [vmem:[%s1283_s3 + $0x210] sm:$0xff] }
  0x51   : > { %374 = vxpose.xlu1.b32.cont [7/16] %v260_v12, 128  ;;  %v321_v12 = vld [vmem:[%s1283_s3 + $0x298] sm:$0xff] }
  0x52   : > { %342 = vxpose.xlu0.b32.cont [7/16] %v244_v13, 128  ;;  %v305_v13 = vld [vmem:[%s1283_s3 + $0x218] sm:$0xff] }
  0x55   : > { %375 = vxpose.xlu1.b32.cont [8/16] %v261_v14, 128 }
  0x56   : > { %343 = vxpose.xlu0.b32.cont [8/16] %v245_v15, 128 }
  0x59   : > { %376 = vxpose.xlu1.b32.cont [9/16] %v262_v16, 128  ;;  %v322_v16 = vld [vmem:[%s1283_s3 + $0x2a0] sm:$0xff] }
  0x5a   : > { %344 = vxpose.xlu0.b32.cont [9/16] %v246_v17, 128  ;;  %v306_v17 = vld [vmem:[%s1283_s3 + $0x220] sm:$0xff] }
  0x5d   : > { %377 = vxpose.xlu1.b32.cont [10/16] %v263_v18, 128 }
  0x5e   : > { %345 = vxpose.xlu0.b32.cont [10/16] %v247_v19, 128 }
  0x61   : > { %378 = vxpose.xlu1.b32.cont [11/16] %v264_v20, 128  ;;  %v323_v20 = vld [vmem:[%s1283_s3 + $0x2a8] sm:$0xff] }
  0x62   : > { %346 = vxpose.xlu0.b32.cont [11/16] %v248_v21, 128  ;;  %v307_v21 = vld [vmem:[%s1283_s3 + $0x228] sm:$0xff] }
  0x65   : > { %379 = vxpose.xlu1.b32.cont [12/16] %v265_v22, 128 }
  0x66   : > { %347 = vxpose.xlu0.b32.cont [12/16] %v249_v23, 128 }
  0x69   : > { %380 = vxpose.xlu1.b32.cont [13/16] %v266_v24, 128  ;;  %v324_v24 = vld [vmem:[%s1283_s3 + $0x2b0] sm:$0xff] }
  0x6a   : > { %348 = vxpose.xlu0.b32.cont [13/16] %v250_v25, 128  ;;  %v308_v25 = vld [vmem:[%s1283_s3 + $0x230] sm:$0xff] }
  0x6d   : > { %381 = vxpose.xlu1.b32.cont [14/16] %v267_v26, 128 }
  0x6e   : > { %349 = vxpose.xlu0.b32.cont [14/16] %v251_v27, 128 }
  0x71   : > { %382 = vxpose.xlu1.b32.cont [15/16] %v268_v28, 128  ;;  %v325_v28 = vld [vmem:[%s1283_s3 + $0x2b8] sm:$0xff] }
  0x72   : > { %350 = vxpose.xlu0.b32.cont [15/16] %v252_v29, 128  ;;  %v309_v29 = vld [vmem:[%s1283_s3 + $0x238] sm:$0xff] }
  0x75   : > { %383 = vxpose.xlu1.b32.end [16/16] %v269_v30, 128 }
  0x76   : > { %351 = vxpose.xlu0.b32.end [16/16] %v253_v31, 128 }
  0x79   : > { %432 = vxpose.xlu1.b32.start [1/16] %v286_v32, 128  ;;  %v326_v32 = vld [vmem:[%s1283_s3 + $0x2c0] sm:$0xff] }
  0x7a   : > { %400 = vxpose.xlu0.b32.start [1/16] %v270_v33, 128  ;;  %v310_v33 = vld [vmem:[%s1283_s3 + $0x240] sm:$0xff] }
  0x7d   : > { %433 = vxpose.xlu1.b32.cont [2/16] %v287_v34, 128 }
  0x7e   : > { %401 = vxpose.xlu0.b32.cont [2/16] %v271_v35, 128 }
  0x81   : > { %434 = vxpose.xlu1.b32.cont [3/16] %v288_v36, 128  ;;  %v327_v36 = vld [vmem:[%s1283_s3 + $0x2c8] sm:$0xff] }
  0x82   : > { %402 = vxpose.xlu0.b32.cont [3/16] %v272_v37, 128  ;;  %v311_v37 = vld [vmem:[%s1283_s3 + $0x248] sm:$0xff] }
  0x85   : > { %435 = vxpose.xlu1.b32.cont [4/16] %v289_v38, 128 }
  0x86   : > { %403 = vxpose.xlu0.b32.cont [4/16] %v273_v39, 128 }
  0x89   : > { %436 = vxpose.xlu1.b32.cont [5/16] %v290_v40, 128  ;;  %v328_v40 = vld [vmem:[%s1283_s3 + $0x2d0] sm:$0xff] }
  0x8a   : > { %404 = vxpose.xlu0.b32.cont [5/16] %v274_v41, 128  ;;  %v312_v41 = vld [vmem:[%s1283_s3 + $0x250] sm:$0xff] }
  0x8d   : > { %437 = vxpose.xlu1.b32.cont [6/16] %v291_v42, 128 }
  0x8e   : > { %405 = vxpose.xlu0.b32.cont [6/16] %v275_v43, 128 }
  0x91   : > { %438 = vxpose.xlu1.b32.cont [7/16] %v292_v44, 128  ;;  %v329_v44 = vld [vmem:[%s1283_s3 + $0x2d8] sm:$0xff] }
  0x92   : > { %406 = vxpose.xlu0.b32.cont [7/16] %v276_v45, 128  ;;  %v313_v45 = vld [vmem:[%s1283_s3 + $0x258] sm:$0xff] }
  0x95   : > { %439 = vxpose.xlu1.b32.cont [8/16] %v293_v46, 128 }
  0x96   : > { %407 = vxpose.xlu0.b32.cont [8/16] %v277_v47, 128 }
  0x99   : > { %440 = vxpose.xlu1.b32.cont [9/16] %v294_v48, 128  ;;  %v330_v48 = vld [vmem:[%s1283_s3 + $0x2e0] sm:$0xff] }
  0x9a   : > { %408 = vxpose.xlu0.b32.cont [9/16] %v278_v49, 128  ;;  %v314_v49 = vld [vmem:[%s1283_s3 + $0x260] sm:$0xff] }
  0x9d   : > { %441 = vxpose.xlu1.b32.cont [10/16] %v295_v50, 128 }
  0x9e   : > { %409 = vxpose.xlu0.b32.cont [10/16] %v279_v51, 128 }
  0xa1   : > { %442 = vxpose.xlu1.b32.cont [11/16] %v296_v52, 128  ;;  %v331_v52 = vld [vmem:[%s1283_s3 + $0x2e8] sm:$0xff] }
  0xa2   : > { %410 = vxpose.xlu0.b32.cont [11/16] %v280_v53, 128  ;;  %v315_v53 = vld [vmem:[%s1283_s3 + $0x268] sm:$0xff] }
  0xa5   : > { %443 = vxpose.xlu1.b32.cont [12/16] %v297_v54, 128 }
  0xa6   : > { %411 = vxpose.xlu0.b32.cont [12/16] %v281_v55, 128 }
  0xa9   : > { %444 = vxpose.xlu1.b32.cont [13/16] %v298_v56, 128  ;;  %v332_v56 = vld [vmem:[%s1283_s3 + $0x2f0] sm:$0xff] }
  0xaa   : > { %412 = vxpose.xlu0.b32.cont [13/16] %v282_v57, 128  ;;  %v316_v57 = vld [vmem:[%s1283_s3 + $0x270] sm:$0xff] }
  0xad   : > { %445 = vxpose.xlu1.b32.cont [14/16] %v299_v58, 128 }
  0xae   : > { %413 = vxpose.xlu0.b32.cont [14/16] %v283_v59, 128 }
  0xb1   : > { %446 = vxpose.xlu1.b32.cont [15/16] %v300_v60, 128  ;;  %v333_v60 = vld [vmem:[%s1283_s3 + $0x2f8] sm:$0xff] }
  0xb2   : > { %414 = vxpose.xlu0.b32.cont [15/16] %v284_v61, 128  ;;  %v317_v61 = vld [vmem:[%s1283_s3 + $0x278] sm:$0xff] }
  0xb5   : > { %447 = vxpose.xlu1.b32.end [16/16] %v301_v62, 128 }
  0xb6   : > { %415 = vxpose.xlu0.b32.end [16/16] %v285_v63, 128 }
  0xb9   : > { %496 = vxpose.xlu1.b32.start [1/16] %v318_v0, 128  ;;  %v1357_v3 = vpop.trf.xlu1  ;;  %v334_v0 = vld [vmem:[%s1283_s3 + $0x300] sm:$0xff] }
  0xba   : > { %464 = vxpose.xlu0.b32.start [1/16] %v302_v1, 128  ;;  %v1355_v2 = vpop.trf.xlu0 }
  0xbd   : > { %497 = vxpose.xlu1.b32.cont [2/16] %v319_v4, 128  ;;  %v1363_v7 = vpop.trf.xlu1 }
  0xbe   : > { %465 = vxpose.xlu0.b32.cont [2/16] %v303_v5, 128  ;;  %v1361_v6 = vpop.trf.xlu0  ;;  %1868 = vst [vmem:[#allocation6_spill] sm:$0xff] %v1363_v7  ;;  %v335_v5 = vld [vmem:[%s1283_s3 + $0x308] sm:$0xff] }
  0xbf   : > { %1867 = vst [vmem:[#allocation5_spill] sm:$0xff] %v1361_v6 }
  0xc1   : > { %498 = vxpose.xlu1.b32.cont [3/16] %v320_v8, 128  ;;  %v1369_v11 = vpop.trf.xlu1 }
  0xc2   : > { %466 = vxpose.xlu0.b32.cont [3/16] %v304_v9, 128  ;;  %v1367_v10 = vpop.trf.xlu0 }
  0xc5   : > { %499 = vxpose.xlu1.b32.cont [4/16] %v321_v12, 128  ;;  %v1375_v15 = vpop.trf.xlu1 }
  0xc6   : > { %467 = vxpose.xlu0.b32.cont [4/16] %v305_v13, 128  ;;  %v1373_v14 = vpop.trf.xlu0 }
  0xc9   : > { %500 = vxpose.xlu1.b32.cont [5/16] %v322_v16, 128  ;;  %v1381_v19 = vpop.trf.xlu1 }
  0xca   : > { %468 = vxpose.xlu0.b32.cont [5/16] %v306_v17, 128  ;;  %v1379_v18 = vpop.trf.xlu0 }
  0xcd   : > { %501 = vxpose.xlu1.b32.cont [6/16] %v323_v20, 128  ;;  %v1387_v23 = vpop.trf.xlu1 }
  0xce   : > { %469 = vxpose.xlu0.b32.cont [6/16] %v307_v21, 128  ;;  %v1385_v22 = vpop.trf.xlu0 }
  0xd1   : > { %502 = vxpose.xlu1.b32.cont [7/16] %v324_v24, 128  ;;  %v1393_v27 = vpop.trf.xlu1 }
  0xd2   : > { %470 = vxpose.xlu0.b32.cont [7/16] %v308_v25, 128  ;;  %v1391_v26 = vpop.trf.xlu0 }
  0xd5   : > { %503 = vxpose.xlu1.b32.cont [8/16] %v325_v28, 128  ;;  %v1399_v31 = vpop.trf.xlu1  ;;  %v560_v28 = vld [vmem:[%s1482_s29] sm:$0xff] }
  0xd6   : > { %471 = vxpose.xlu0.b32.cont [8/16] %v309_v29, 128  ;;  %v1397_v30 = vpop.trf.xlu0 }
  0xd9   : > { %504 = vxpose.xlu1.b32.cont [9/16] %v326_v32, 128  ;;  %v1405_v35 = vpop.trf.xlu1 }
  0xda   : > { %472 = vxpose.xlu0.b32.cont [9/16] %v310_v33, 128  ;;  %v1403_v34 = vpop.trf.xlu0  ;;  %v1174_v33 = vmov 0  }
  0xdd   : > { %505 = vxpose.xlu1.b32.cont [10/16] %v327_v36, 128  ;;  %v1411_v39 = vpop.trf.xlu1  ;;  %v562_v36 = vld [vmem:[%s1482_s29 + $0x10] sm:$0xff] }
  0xde   : > { %473 = vxpose.xlu0.b32.cont [10/16] %v311_v37, 128  ;;  %v1409_v38 = vpop.trf.xlu0 }
  0xe1   : > { %506 = vxpose.xlu1.b32.cont [11/16] %v328_v40, 128  ;;  %v1417_v43 = vpop.trf.xlu1 }
  0xe2   : > { %474 = vxpose.xlu0.b32.cont [11/16] %v312_v41, 128  ;;  %v1415_v42 = vpop.trf.xlu0  ;;  %1870 = vst [vmem:[#allocation8_spill] sm:$0xff] %v1417_v43  ;;  %v563_v41 = vld [vmem:[%s1482_s29 + $0x18] sm:$0xff] }
  0xe3   : > { %1869 = vst [vmem:[#allocation7_spill] sm:$0xff] %v1415_v42 }
  0xe5   : > { %507 = vxpose.xlu1.b32.cont [12/16] %v329_v44, 128  ;;  %v1423_v47 = vpop.trf.xlu1 }
  0xe6   : > { %475 = vxpose.xlu0.b32.cont [12/16] %v313_v45, 128  ;;  %v1421_v46 = vpop.trf.xlu0  ;;  %1872 = vst [vmem:[#allocation10_spill] sm:$0xff] %v1423_v47 }
  0xe7   : > { %1871 = vst [vmem:[#allocation9_spill] sm:$0xff] %v1421_v46 }
  0xe9   : > { %508 = vxpose.xlu1.b32.cont [13/16] %v330_v48, 128  ;;  %v1429_v51 = vpop.trf.xlu1  ;;  %v564_v48 = vld [vmem:[%s1482_s29 + $0x20] sm:$0xff] }
  0xea   : > { %476 = vxpose.xlu0.b32.cont [13/16] %v314_v49, 128  ;;  %v1427_v50 = vpop.trf.xlu0  ;;  %1874 = vst [vmem:[#allocation12_spill] sm:$0xff] %v1429_v51 }
  0xeb   : > { %1873 = vst [vmem:[#allocation11_spill] sm:$0xff] %v1427_v50 }
  0xed   : > { %509 = vxpose.xlu1.b32.cont [14/16] %v331_v52, 128  ;;  %v1435_v55 = vpop.trf.xlu1 }
  0xee   : > { %477 = vxpose.xlu0.b32.cont [14/16] %v315_v53, 128  ;;  %v1433_v54 = vpop.trf.xlu0  ;;  %1876 = vst [vmem:[#allocation14_spill] sm:$0xff] %v1435_v55  ;;  %v565_v53 = vld [vmem:[%s1482_s29 + $0x28] sm:$0xff] }
  0xef   : > { %1875 = vst [vmem:[#allocation13_spill] sm:$0xff] %v1433_v54 }
  0xf1   : > { %510 = vxpose.xlu1.b32.cont [15/16] %v332_v56, 128  ;;  %v1441_v59 = vpop.trf.xlu1 }
  0xf2   : > { %478 = vxpose.xlu0.b32.cont [15/16] %v316_v57, 128  ;;  %v1439_v58 = vpop.trf.xlu0  ;;  %1878 = vst [vmem:[#allocation16_spill] sm:$0xff] %v1441_v59 }
  0xf3   : > { %1877 = vst [vmem:[#allocation15_spill] sm:$0xff] %v1439_v58 }
  0xf5   : > { %511 = vxpose.xlu1.b32.end [16/16] %v333_v60, 128  ;;  %v1447_v63 = vpop.trf.xlu1  ;;  %v566_v60 = vld [vmem:[%s1482_s29 + $0x30] sm:$0xff] }
  0xf6   : > { %479 = vxpose.xlu0.b32.end [16/16] %v317_v61, 128  ;;  %v1445_v62 = vpop.trf.xlu0  ;;  %1880 = vst [vmem:[#allocation18_spill] sm:$0xff] %v1447_v63 }
  0xf7   : > { %1879 = vst [vmem:[#allocation17_spill] sm:$0xff] %v1445_v62 }
  0xf9   : > { %v1452_v4 = vpop.trf.xlu1 }
  0xfa   : > { %528 = vxpose.xlu0.b32.start [1/2] (short) %v334_v0, 128  ;;  %v1450_v1 = vpop.trf.xlu0 }
  0xfd   : > { %v1457_v9 = vpop.trf.xlu1 }
  0xfe   : > { %529 = vxpose.xlu0.b32.end [2/2] (short) %v335_v5, 128  ;;  %v1455_v8 = vpop.trf.xlu0  ;;  %1882 = vst [vmem:[#allocation20_spill] sm:$0xff] %v1457_v9  ;;  %v567_v5 = vld [vmem:[%s1482_s29 + $0x38] sm:$0xff]  ;;  %v569_v9 = vld [vmem:[%s1482_s29 + $0x48] sm:$0xff] }
  0xff   : > { %1881 = vst [vmem:[#allocation19_spill] sm:$0xff] %v1455_v8 }
 0x101   : > { %v1462_v13 = vpop.trf.xlu1 }
 0x102   : > { %v1460_v12 = vpop.trf.xlu0 }
 0x105   : > { %v1466_v17 = vpop.trf.xlu1 }
 0x106   : > { %v1464_v16 = vpop.trf.xlu0 }
 0x109   : > { %v1472_v21 = vpop.trf.xlu1 }
 0x10a   : > { %v1470_v20 = vpop.trf.xlu0 }
 0x10d   : > { %v1477_v25 = vpop.trf.xlu1 }
 0x10e   : > { %v1475_v24 = vpop.trf.xlu0 }
 0x111   : > { %v1487_v32 = vpop.trf.xlu1 }
 0x112   : > { %v1485_v29 = vpop.trf.xlu0 }
 0x113   : > { %1086 = vset.pattern.permute.xlu1 %v1174_v33 }
 0x114   : > { %578 = vperm.xlu1 %1086, %v560_v28  }
 0x115   : > { %v1492_v40 = vpop.trf.xlu1 }
 0x116   : > { %v1490_v37 = vpop.trf.xlu0 }
 0x118   : > { %588 = vperm.xlu1 %1086, %v562_v36  }
 0x119   : > { %v1497_v45 = vpop.trf.xlu1 }
 0x11a   : > { %v1495_v44 = vpop.trf.xlu0 }
 0x11c   : > { %593 = vperm.xlu1 %1086, %v563_v41   ;;  %v568_v41 = vld [vmem:[%s1482_s29 + $0x40] sm:$0xff] }
 0x11d   : > { %v1502_v52 = vpop.trf.xlu1 }
 0x11e   : > { %v1500_v49 = vpop.trf.xlu0  ;;  %1884 = vst [vmem:[#allocation22_spill] sm:$0xff] %v1502_v52 }
 0x11f   : > { %1883 = vst [vmem:[#allocation21_spill] sm:$0xff] %v1500_v49 }
 0x120   : > { %598 = vperm.xlu1 %1086, %v564_v48  }
 0x121   : > { %v1507_v57 = vpop.trf.xlu1 }
 0x122   : > { %v1505_v56 = vpop.trf.xlu0  ;;  %1886 = vst [vmem:[#allocation24_spill] sm:$0xff] %v1507_v57 }
 0x123   : > { %1885 = vst [vmem:[#allocation23_spill] sm:$0xff] %v1505_v56 }
 0x124   : > { %603 = vperm.xlu1 %1086, %v565_v53  }
 0x125   : > { %v1512_v0 = vpop.trf.xlu1 }
 0x126   : > { %v1510_v61 = vpop.trf.xlu0  ;;  %1888 = vst [vmem:[#allocation26_spill] sm:$0xff] %v1512_v0 }
 0x127   : > { %1887 = vst [vmem:[#allocation25_spill] sm:$0xff] %v1510_v61  ;;  %1087 = vset.pattern.permute.xlu0 %v1174_v33 }
 0x128   : > { %608 = vperm.xlu1 %1086, %v566_v60   ;;  %v570_v60 = vld [vmem:[%s1482_s29 + $0x50] sm:$0xff] }
 0x129   : > { %v1517_v36 = vpop.trf.xlu1 }
 0x12a   : > { %v1515_v28 = vpop.trf.xlu0  ;;  %1890 = vst [vmem:[#allocation28_spill] sm:$0xff] %v1517_v36  ;;  %v561_v36 = vld [vmem:[%s1482_s29 + $0x8] sm:$0xff] }
 0x12b   : > { %1889 = vst [vmem:[#allocation27_spill] sm:$0xff] %v1515_v28 }
 0x12c   : > { %613 = vperm.xlu1 %1086, %v567_v5   ;;  %v571_v5 = vld [vmem:[%s1482_s29 + $0x58] sm:$0xff] }
 0x12d   : > { %v1522_v53 = vpop.trf.xlu1 }
 0x12e   : > { %v1520_v48 = vpop.trf.xlu0  ;;  %1892 = vst [vmem:[#allocation30_spill] sm:$0xff] %v1522_v53 }
 0x12f   : > { %1891 = vst [vmem:[#allocation29_spill] sm:$0xff] %v1520_v48 }
 0x130   : > { %618 = vperm.xlu1 %1086, %v568_v41   ;;  %v572_v41 = vld [vmem:[%s1482_s29 + $0x60] sm:$0xff] }
 0x131   : > { %v1527_v33 = vpop.trf.xlu1 }
 0x132   : > { %v1525_v8 = vpop.trf.xlu0  ;;  %1894 = vst [vmem:[#allocation32_spill] sm:$0xff] %v1527_v33  ;;  %v573_v33 = vld [vmem:[%s1482_s29 + $0x68] sm:$0xff] }
 0x133   : > { %1893 = vst [vmem:[#allocation31_spill] sm:$0xff] %v1525_v8 }
 0x134   : > { %623 = vperm.xlu1 %1086, %v569_v9  }
 0x135   : > { %v1532_v6 = vpop.trf.xlu1 }
 0x136   : > { %v1530_v7 = vpop.trf.xlu0  ;;  %1896 = vst [vmem:[#allocation34_spill] sm:$0xff] %v1532_v6  ;;  %v574_v6 = vld [vmem:[%s1482_s29 + $0x70] sm:$0xff] }
 0x137   : > { %1895 = vst [vmem:[#allocation33_spill] sm:$0xff] %v1530_v7 }
 0x138   : > { %628 = vperm.xlu1 %1086, %v570_v60  }
 0x139   : > { %v512_v62 = vpop.trf.xlu1 }
 0x13a   : > { %v480_v63 = vpop.trf.xlu0 }
 0x13c   : > { %633 = vperm.xlu1 %1086, %v571_v5   ;;  %v575_v5 = vld [vmem:[%s1482_s29 + $0x78] sm:$0xff] }
 0x13d   : > { %v1538_v58 = vpop.trf.xlu1 }
 0x13e   : > { %v1536_v59 = vpop.trf.xlu0  ;;  %1898 = vst [vmem:[#allocation36_spill] sm:$0xff] %v1538_v58 }
 0x13f   : > { %1897 = vst [vmem:[#allocation35_spill] sm:$0xff] %v1536_v59 }
 0x140   : > { %638 = vperm.xlu1 %1086, %v572_v41  }
 0x141   : > { %v1543_v8 = vpop.trf.xlu1 }
 0x142   : > { %v1541_v9 = vpop.trf.xlu0 }
 0x144   : > { %643 = vperm.xlu1 %1086, %v573_v33  }
 0x145   : > { %v1548_v7 = vpop.trf.xlu1 }
 0x146   : > { %v1546_v60 = vpop.trf.xlu0 }
 0x148   : > { %648 = vperm.xlu1 %1086, %v574_v6  }
 0x149   : > { %v1553_v59 = vpop.trf.xlu1 }
 0x14a   : > { %v1551_v53 = vpop.trf.xlu0 }
 0x14c   : > { %653 = vperm.xlu1 %1086, %v575_v5  }
 0x14d   : > { %v1557_v58 = vpop.trf.xlu1 }
 0x14e   : > { %v1555_v41 = vpop.trf.xlu0 }
 0x151   : > { %v1563_v33 = vpop.trf.xlu1 }
 0x152   : > { %v1559_v48 = vpop.trf.xlu0 }
 0x155   : > { %v1568_v6 = vpop.trf.xlu1 }
 0x156   : > { %v1561_v55 = vpop.trf.xlu0 }
 0x159   : > { %v1574_v5 = vpop.trf.xlu1 }
 0x15a   : > { %v1565_v54 = vpop.trf.xlu0 }
 0x15d   : > { %v1578_v0 = vpop.trf.xlu1 }
 0x15e   : > { %v1570_v28 = vpop.trf.xlu0  ;;  %1902 = vst [vmem:[#allocation40_spill] sm:$0xff] %v1578_v0 }
 0x15f   : > { %1899 = vst [vmem:[#allocation37_spill] sm:$0xff] %v1570_v28  ;;  %583 = vperm.xlu0 %1087, %v561_v36  }
 0x161   : > { %v1584_v46 = vpop.trf.xlu1 }
 0x162   : > { %v1572_v51 = vpop.trf.xlu0  ;;  %1905 = vst [vmem:[#allocation43_spill] sm:$0xff] %v1584_v46 }
 0x163   : > { %1900 = vst [vmem:[#allocation38_spill] sm:$0xff] %v1572_v51 }
 0x165   : > { %v1588_v56 = vpop.trf.xlu1 }
 0x166   : > { %v1576_v50 = vpop.trf.xlu0  ;;  %1907 = vst [vmem:[#allocation45_spill] sm:$0xff] %v1588_v56 }
 0x167   : > { %1901 = vst [vmem:[#allocation39_spill] sm:$0xff] %v1576_v50 }
 0x169   : > { %v1592_v43 = vpop.trf.xlu1 }
 0x16a   : > { %v1580_v61 = vpop.trf.xlu0  ;;  %1909 = vst [vmem:[#allocation47_spill] sm:$0xff] %v1592_v43 }
 0x16b   : > { %1903 = vst [vmem:[#allocation41_spill] sm:$0xff] %v1580_v61 }
 0x16d   : > { %v1596_v50 = vpop.trf.xlu1 }
 0x16e   : > { %v1582_v47 = vpop.trf.xlu0  ;;  %1911 = vst [vmem:[#allocation49_spill] sm:$0xff] %v1596_v50 }
 0x16f   : > { %1904 = vst [vmem:[#allocation42_spill] sm:$0xff] %v1582_v47 }
 0x171   : > { %v1598_v28 = vpop.trf.xlu1 }
 0x172   : > { %v1586_v57 = vpop.trf.xlu0  ;;  %1912 = vst [vmem:[#allocation50_spill] sm:$0xff] %v1598_v28 }
 0x173   : > { %1906 = vst [vmem:[#allocation44_spill] sm:$0xff] %v1586_v57 }
 0x175   : > { %v1600_v52 = vpop.trf.xlu1 }
 0x176   : > { %v1590_v36 = vpop.trf.xlu0  ;;  %1913 = vst [vmem:[#allocation51_spill] sm:$0xff] %v1600_v52 }
 0x177   : > { %1908 = vst [vmem:[#allocation46_spill] sm:$0xff] %v1590_v36 }
 0x17a   : > { %v544_v51 = vpop.trf.xlu0 }
 0x17e   : > { %v1594_v42 = vpop.trf.xlu0 }
 0x17f   : > { %1910 = vst [vmem:[#allocation48_spill] sm:$0xff] %v1594_v42 }
 0x182   : > { %v546_v0 = vpop.trf.xlu0 }
 0x186   : > { %v547_v61 = vpop.trf.xlu0 }
 0x18a   : > { %v548_v47 = vpop.trf.xlu0 }
 0x18e   : > { %v1602_v46 = vpop.trf.xlu0 }
 0x192   : > { %v1614_v50 = vpop.trf.xlu0 }
 0x193   : > { %v579_v42 = vpop.permute.xlu1 %578 }
 0x194   : > { %v656_v36 = vmul.f32 %v579_v42, %v1355_v2  ;;  %v657_v52 = vmul.f32 %v579_v42, %v1357_v3  ;;  %v658_v28 = vmul.f32 %v579_v42, %v1450_v1  ;;  %v659_v57 = vmul.f32 %v579_v42, %v1452_v4 }
 0x195   : > { %v660_v43 = vmul.f32 %v579_v42, %v480_v63  ;;  %v661_v56 = vmul.f32 %v579_v42, %v512_v62  ;;  %v662_v49 = vmul.f32 %v579_v42, %v544_v51 }
 0x196   : > { %768 = vst [vmem:[%s1608_s6] sm:$0xff] %v656_v36  ;;  %769 = vst [vmem:[%s1608_s6 + $0x8] sm:$0xff] %v657_v52 }
 0x197   : > { %770 = vst [vmem:[%s1608_s6 + $0x10] sm:$0xff] %v658_v28  ;;  %771 = vst [vmem:[%s1608_s6 + $0x18] sm:$0xff] %v659_v57  ;;  %v589_v2 = vpop.permute.xlu1 %588 }
 0x198   : > { %772 = vst [vmem:[%s1608_s6 + $0x20] sm:$0xff] %v660_v43  ;;  %773 = vst [vmem:[%s1608_s6 + $0x28] sm:$0xff] %v661_v56  ;;  %v670_v3 = vmul.f32 %v589_v2, %v1367_v10  ;;  %v671_v42 = vmul.f32 %v589_v2, %v1369_v11  ;;  %v672_v51 = vmul.f32 %v589_v2, %v1460_v12  ;;  %v1634_v10 = vpop.trf.xlu0 }
 0x199   : > { %775 = vst.msk [vmem:[%s1608_s6 + $0x30] sm:$0xff] %vm774_vm0, %v662_v49  ;;  %v673_v62 = vmul.f32 %v589_v2, %v1462_v13  ;;  %v674_v63 = vmul.f32 %v589_v2, %v1541_v9  ;;  %v675_v1 = vmul.f32 %v589_v2, %v1543_v8  ;;  %v676_v43 = vmul.f32 %v589_v2, %v546_v0 }
 0x19a   : > { %783 = vst [vmem:[%s1608_s6 + $0x70] sm:$0xff] %v670_v3  ;;  %784 = vst [vmem:[%s1608_s6 + $0x78] sm:$0xff] %v671_v42 }
 0x19b   : > { %785 = vst [vmem:[%s1608_s6 + $0x80] sm:$0xff] %v672_v51  ;;  %786 = vst [vmem:[%s1608_s6 + $0x88] sm:$0xff] %v673_v62  ;;  %v594_v11 = vpop.permute.xlu1 %593  ;;  %v1915_v62 = vld [vmem:[#allocation22_spill] sm:$0xff] }
 0x19c   : > { %787 = vst [vmem:[%s1608_s6 + $0x90] sm:$0xff] %v674_v63  ;;  %788 = vst [vmem:[%s1608_s6 + $0x98] sm:$0xff] %v675_v1  ;;  %v677_v4 = vmul.f32 %v594_v11, %v1373_v14  ;;  %v678_v8 = vmul.f32 %v594_v11, %v1375_v15  ;;  %v679_v12 = vmul.f32 %v594_v11, %v1464_v16  ;;  %v1658_v57 = vpop.trf.xlu0  ;;  %v1916_v1 = vld [vmem:[#allocation37_spill] sm:$0xff] }
 0x19d   : > { %789 = vst.msk [vmem:[%s1608_s6 + $0xa0] sm:$0xff] %vm774_vm0, %v676_v43  ;;  %v680_v13 = vmul.f32 %v594_v11, %v1466_v17  ;;  %v681_v49 = vmul.f32 %v594_v11, %v1546_v60  ;;  %v682_v52 = vmul.f32 %v594_v11, %v1548_v7  ;;  %v683_v56 = vmul.f32 %v594_v11, %v547_v61 }
 0x19e   : > { %790 = vst [vmem:[%s1608_s6 + $0xa8] sm:$0xff] %v677_v4  ;;  %791 = vst [vmem:[%s1608_s6 + $0xb0] sm:$0xff] %v678_v8 }
 0x19f   : > { %792 = vst [vmem:[%s1608_s6 + $0xb8] sm:$0xff] %v679_v12  ;;  %793 = vst [vmem:[%s1608_s6 + $0xc0] sm:$0xff] %v680_v13  ;;  %v599_v14 = vpop.permute.xlu1 %598  ;;  %v1919_v12 = vld [vmem:[#allocation8_spill] sm:$0xff] }
 0x1a0   : > { %794 = vst [vmem:[%s1608_s6 + $0xc8] sm:$0xff] %v681_v49  ;;  %795 = vst [vmem:[%s1608_s6 + $0xd0] sm:$0xff] %v682_v52  ;;  %v684_v15 = vmul.f32 %v599_v14, %v1379_v18  ;;  %v685_v7 = vmul.f32 %v599_v14, %v1381_v19  ;;  %v686_v16 = vmul.f32 %v599_v14, %v1470_v20  ;;  %v1920_v49 = vld [vmem:[#allocation23_spill] sm:$0xff] }
 0x1a1   : > { %796 = vst.msk [vmem:[%s1608_s6 + $0xd8] sm:$0xff] %vm774_vm0, %v683_v56  ;;  %v687_v17 = vmul.f32 %v599_v14, %v1472_v21  ;;  %v688_v61 = vmul.f32 %v599_v14, %v1551_v53  ;;  %v689_v0 = vmul.f32 %v599_v14, %v1553_v59  ;;  %v690_v28 = vmul.f32 %v599_v14, %v548_v47  ;;  %v1921_v56 = vld [vmem:[#allocation24_spill] sm:$0xff] }
 0x1a2   : > { %797 = vst [vmem:[%s1608_s6 + $0xe0] sm:$0xff] %v684_v15  ;;  %798 = vst [vmem:[%s1608_s6 + $0xe8] sm:$0xff] %v685_v7  ;;  %v1922_v7 = vld [vmem:[#allocation38_spill] sm:$0xff] }
 0x1a3   : > { %799 = vst [vmem:[%s1608_s6 + $0xf0] sm:$0xff] %v686_v16  ;;  %800 = vst [vmem:[%s1608_s6 + $0xf8] sm:$0xff] %v687_v17  ;;  %v604_v18 = vpop.permute.xlu1 %603  ;;  %v1923_v17 = vld [vmem:[#allocation43_spill] sm:$0xff] }
 0x1a4   : > { %801 = vst [vmem:[%s1608_s6 + $0x100] sm:$0xff] %v688_v61  ;;  %802 = vst [vmem:[%s1608_s6 + $0x108] sm:$0xff] %v689_v0  ;;  %v691_v19 = vmul.f32 %v604_v18, %v1385_v22  ;;  %v692_v47 = vmul.f32 %v604_v18, %v1387_v23  ;;  %v693_v59 = vmul.f32 %v604_v18, %v1475_v24  ;;  %v553_v22 = vpop.trf.xlu0 }
 0x1a5   : > { %803 = vst.msk [vmem:[%s1608_s6 + $0x110] sm:$0xff] %vm774_vm0, %v690_v28  ;;  %v694_v20 = vmul.f32 %v604_v18, %v1477_v25  ;;  %v695_v21 = vmul.f32 %v604_v18, %v1555_v41  ;;  %v696_v53 = vmul.f32 %v604_v18, %v1557_v58  ;;  %v697_v9 = vmul.f32 %v604_v18, %v1602_v46  ;;  %v1924_v28 = vld [vmem:[#allocation9_spill] sm:$0xff] }
 0x1a6   : > { %804 = vst [vmem:[%s1608_s6 + $0x118] sm:$0xff] %v691_v19  ;;  %805 = vst [vmem:[%s1608_s6 + $0x120] sm:$0xff] %v692_v47  ;;  %v1925_v19 = vld [vmem:[#allocation10_spill] sm:$0xff] }
 0x1a7   : > { %806 = vst [vmem:[%s1608_s6 + $0x128] sm:$0xff] %v693_v59  ;;  %807 = vst [vmem:[%s1608_s6 + $0x130] sm:$0xff] %v694_v20  ;;  %v609_v23 = vpop.permute.xlu1 %608  ;;  %v1926_v59 = vld [vmem:[#allocation25_spill] sm:$0xff] }
 0x1a8   : > { %808 = vst [vmem:[%s1608_s6 + $0x138] sm:$0xff] %v695_v21  ;;  %809 = vst [vmem:[%s1608_s6 + $0x140] sm:$0xff] %v696_v53  ;;  %v698_v58 = vmul.f32 %v609_v23, %v1391_v26  ;;  %v699_v46 = vmul.f32 %v609_v23, %v1393_v27  ;;  %v700_v24 = vmul.f32 %v609_v23, %v1485_v29  ;;  %v1927_v21 = vld [vmem:[#allocation26_spill] sm:$0xff] }
 0x1a9   : > { %810 = vst.msk [vmem:[%s1608_s6 + $0x148] sm:$0xff] %vm774_vm0, %v697_v9  ;;  %v701_v25 = vmul.f32 %v609_v23, %v1487_v32  ;;  %v702_v60 = vmul.f32 %v609_v23, %v1559_v48  ;;  %v703_v41 = vmul.f32 %v609_v23, %v1563_v33  ;;  %v704_v36 = vmul.f32 %v609_v23, %v1614_v50  ;;  %v554_v48 = vpop.trf.xlu0  ;;  %v1928_v9 = vld [vmem:[#allocation39_spill] sm:$0xff]  ;;  %v1929_v23 = vld [vmem:[#allocation45_spill] sm:$0xff] }
 0x1aa   : > { %811 = vst [vmem:[%s1608_s6 + $0x150] sm:$0xff] %v698_v58  ;;  %812 = vst [vmem:[%s1608_s6 + $0x158] sm:$0xff] %v699_v46 }
 0x1ab   : > { %813 = vst [vmem:[%s1608_s6 + $0x160] sm:$0xff] %v700_v24  ;;  %814 = vst [vmem:[%s1608_s6 + $0x168] sm:$0xff] %v701_v25  ;;  %v614_v26 = vpop.permute.xlu1 %613 }
 0x1ac   : > { %815 = vst [vmem:[%s1608_s6 + $0x170] sm:$0xff] %v702_v60  ;;  %816 = vst [vmem:[%s1608_s6 + $0x178] sm:$0xff] %v703_v41  ;;  %v705_v27 = vmul.f32 %v614_v26, %v1397_v30  ;;  %v706_v50 = vmul.f32 %v614_v26, %v1399_v31  ;;  %v707_v29 = vmul.f32 %v614_v26, %v1490_v37  ;;  %v1930_v60 = vld [vmem:[#allocation11_spill] sm:$0xff] }
 0x1ad   : > { %817 = vst.msk [vmem:[%s1608_s6 + $0x180] sm:$0xff] %vm774_vm0, %v704_v36  ;;  %v708_v32 = vmul.f32 %v614_v26, %v1492_v40  ;;  %v709_v33 = vmul.f32 %v614_v26, %v1561_v55  ;;  %v710_v2 = vmul.f32 %v614_v26, %v1568_v6  ;;  %v711_v3 = vmul.f32 %v614_v26, %v1634_v10  ;;  %v1917_v10 = vld [vmem:[#allocation40_spill] sm:$0xff] }
 0x1ae   : > { %818 = vst [vmem:[%s1608_s6 + $0x188] sm:$0xff] %v705_v27  ;;  %819 = vst [vmem:[%s1608_s6 + $0x190] sm:$0xff] %v706_v50  ;;  %v1931_v36 = vld [vmem:[#allocation12_spill] sm:$0xff]  ;;  %v1932_v27 = vld [vmem:[#allocation27_spill] sm:$0xff] }
 0x1af   : > { %820 = vst [vmem:[%s1608_s6 + $0x198] sm:$0xff] %v707_v29  ;;  %821 = vst [vmem:[%s1608_s6 + $0x1a0] sm:$0xff] %v708_v32  ;;  %v619_v30 = vpop.permute.xlu1 %618  ;;  %v1933_v29 = vld [vmem:[#allocation28_spill] sm:$0xff] }
 0x1b0   : > { %822 = vst [vmem:[%s1608_s6 + $0x1a8] sm:$0xff] %v709_v33  ;;  %823 = vst [vmem:[%s1608_s6 + $0x1b0] sm:$0xff] %v710_v2  ;;  %v712_v31 = vmul.f32 %v619_v30, %v1403_v34  ;;  %v713_v55 = vmul.f32 %v619_v30, %v1405_v35  ;;  %v714_v37 = vmul.f32 %v619_v30, %v1495_v44  ;;  %v555_v34 = vpop.trf.xlu0  ;;  %v1935_v2 = vld [vmem:[#allocation47_spill] sm:$0xff] }
 0x1b1   : > { %824 = vst.msk [vmem:[%s1608_s6 + $0x1b8] sm:$0xff] %vm774_vm0, %v711_v3  ;;  %v715_v40 = vmul.f32 %v619_v30, %v1497_v45  ;;  %v716_v6 = vmul.f32 %v619_v30, %v1565_v54  ;;  %v717_v42 = vmul.f32 %v619_v30, %v1574_v5  ;;  %v718_v51 = vmul.f32 %v619_v30, %v1658_v57  ;;  %v1914_v45 = vld [vmem:[#allocation21_spill] sm:$0xff] }
 0x1b2   : > { %825 = vst [vmem:[%s1608_s6 + $0x1c0] sm:$0xff] %v712_v31  ;;  %826 = vst [vmem:[%s1608_s6 + $0x1c8] sm:$0xff] %v713_v55  ;;  %v1936_v55 = vld [vmem:[#allocation13_spill] sm:$0xff] }
 0x1b3   : > { %827 = vst [vmem:[%s1608_s6 + $0x1d0] sm:$0xff] %v714_v37  ;;  %828 = vst [vmem:[%s1608_s6 + $0x1d8] sm:$0xff] %v715_v40  ;;  %v624_v35 = vpop.permute.xlu1 %623  ;;  %v1937_v40 = vld [vmem:[#allocation14_spill] sm:$0xff] }
 0x1b4   : > { %829 = vst [vmem:[%s1608_s6 + $0x1e0] sm:$0xff] %v716_v6  ;;  %830 = vst [vmem:[%s1608_s6 + $0x1e8] sm:$0xff] %v717_v42  ;;  %v719_v54 = vmul.f32 %v624_v35, %v1409_v38  ;;  %v720_v44 = vmul.f32 %v624_v35, %v1411_v39  ;;  %v721_v5 = vmul.f32 %v624_v35, %v1914_v45  ;;  %v1918_v39 = vld [vmem:[#allocation7_spill] sm:$0xff]  ;;  %v556_v15 = vpop.trf.xlu0  ;;  %v1938_v42 = vld [vmem:[#allocation29_spill] sm:$0xff] }
 0x1b5   : > { %831 = vst.msk [vmem:[%s1608_s6 + $0x1f0] sm:$0xff] %vm774_vm0, %v718_v51  ;;  %v722_v63 = vmul.f32 %v624_v35, %v1915_v62  ;;  %v723_v43 = vmul.f32 %v624_v35, %v1916_v1  ;;  %v724_v11 = vmul.f32 %v624_v35, %v1917_v10  ;;  %v725_v4 = vmul.f32 %v624_v35, %v553_v22 }
 0x1b6   : > { %832 = vst [vmem:[%s1608_s6 + $0x1f8] sm:$0xff] %v719_v54  ;;  %833 = vst [vmem:[%s1608_s6 + $0x200] sm:$0xff] %v720_v44  ;;  %v1940_v44 = vld [vmem:[#allocation42_spill] sm:$0xff] }
 0x1b7   : > { %834 = vst [vmem:[%s1608_s6 + $0x208] sm:$0xff] %v721_v5  ;;  %835 = vst [vmem:[%s1608_s6 + $0x210] sm:$0xff] %v722_v63  ;;  %v629_v38 = vpop.permute.xlu1 %628  ;;  %v1941_v5 = vld [vmem:[#allocation49_spill] sm:$0xff] }
 0x1b8   : > { %836 = vst [vmem:[%s1608_s6 + $0x218] sm:$0xff] %v723_v43  ;;  %837 = vst [vmem:[%s1608_s6 + $0x220] sm:$0xff] %v724_v11  ;;  %v726_v8 = vmul.f32 %v629_v38, %v1918_v39  ;;  %v727_v13 = vmul.f32 %v629_v38, %v1919_v12  ;;  %v728_v52 = vmul.f32 %v629_v38, %v1920_v49  ;;  %v557_v24 = vpop.trf.xlu0  ;;  %v1942_v43 = vld [vmem:[#allocation15_spill] sm:$0xff]  ;;  %v1943_v11 = vld [vmem:[#allocation16_spill] sm:$0xff] }
 0x1b9   : > { %838 = vst.msk [vmem:[%s1608_s6 + $0x228] sm:$0xff] %vm774_vm0, %v725_v4  ;;  %v729_v14 = vmul.f32 %v629_v38, %v1921_v56  ;;  %v730_v16 = vmul.f32 %v629_v38, %v1922_v7  ;;  %v731_v57 = vmul.f32 %v629_v38, %v1923_v17  ;;  %v732_v61 = vmul.f32 %v629_v38, %v554_v48  ;;  %v1934_v48 = vld [vmem:[#allocation41_spill] sm:$0xff]  ;;  %v1944_v38 = vld [vmem:[#allocation31_spill] sm:$0xff] }
 0x1ba   : > { %839 = vst [vmem:[%s1608_s6 + $0x230] sm:$0xff] %v726_v8  ;;  %840 = vst [vmem:[%s1608_s6 + $0x238] sm:$0xff] %v727_v13  ;;  %v1945_v8 = vld [vmem:[#allocation32_spill] sm:$0xff] }
 0x1bb   : > { %841 = vst [vmem:[%s1608_s6 + $0x240] sm:$0xff] %v728_v52  ;;  %842 = vst [vmem:[%s1608_s6 + $0x248] sm:$0xff] %v729_v14  ;;  %v634_v0 = vpop.permute.xlu1 %633  ;;  %v1946_v13 = vld [vmem:[#allocation44_spill] sm:$0xff]  ;;  %v1947_v52 = vld [vmem:[#allocation50_spill] sm:$0xff] }
 0x1bc   : > { %843 = vst [vmem:[%s1608_s6 + $0x250] sm:$0xff] %v730_v16  ;;  %844 = vst [vmem:[%s1608_s6 + $0x258] sm:$0xff] %v731_v57  ;;  %v733_v18 = vmul.f32 %v634_v0, %v1924_v28  ;;  %v734_v47 = vmul.f32 %v634_v0, %v1925_v19  ;;  %v735_v20 = vmul.f32 %v634_v0, %v1926_v59  ;;  %v558_v54 = vpop.trf.xlu0  ;;  %v1948_v16 = vld [vmem:[#allocation17_spill] sm:$0xff]  ;;  %v1949_v57 = vld [vmem:[#allocation18_spill] sm:$0xff] }
 0x1bd   : > { %845 = vst.msk [vmem:[%s1608_s6 + $0x260] sm:$0xff] %vm774_vm0, %v732_v61  ;;  %v736_v53 = vmul.f32 %v634_v0, %v1927_v21  ;;  %v737_v22 = vmul.f32 %v634_v0, %v1928_v9  ;;  %v738_v58 = vmul.f32 %v634_v0, %v1929_v23  ;;  %v739_v46 = vmul.f32 %v634_v0, %v555_v34  ;;  %v1939_v34 = vld [vmem:[#allocation30_spill] sm:$0xff]  ;;  %v1950_v0 = vld [vmem:[#allocation33_spill] sm:$0xff] }
 0x1be   : > { %846 = vst [vmem:[%s1608_s6 + $0x268] sm:$0xff] %v733_v18  ;;  %847 = vst [vmem:[%s1608_s6 + $0x270] sm:$0xff] %v734_v47  ;;  %v1951_v18 = vld [vmem:[#allocation34_spill] sm:$0xff] }
 0x1bf   : > { %848 = vst [vmem:[%s1608_s6 + $0x278] sm:$0xff] %v735_v20  ;;  %849 = vst [vmem:[%s1608_s6 + $0x280] sm:$0xff] %v736_v53  ;;  %v639_v25 = vpop.permute.xlu1 %638  ;;  %v1952_v47 = vld [vmem:[#allocation46_spill] sm:$0xff]  ;;  %v1953_v20 = vld [vmem:[#allocation51_spill] sm:$0xff] }
 0x1c0   : > { %850 = vst [vmem:[%s1608_s6 + $0x288] sm:$0xff] %v737_v22  ;;  %851 = vst [vmem:[%s1608_s6 + $0x290] sm:$0xff] %v738_v58  ;;  %v740_v41 = vmul.f32 %v639_v25, %v1930_v60  ;;  %v741_v26 = vmul.f32 %v639_v25, %v1931_v36  ;;  %v742_v50 = vmul.f32 %v639_v25, %v1932_v27  ;;  %v1954_v22 = vld [vmem:[#allocation5_spill] sm:$0xff]  ;;  %v1955_v58 = vld [vmem:[#allocation6_spill] sm:$0xff] }
 0x1c1   : > { %852 = vst.msk [vmem:[%s1608_s6 + $0x298] sm:$0xff] %vm774_vm0, %v739_v46  ;;  %v743_v32 = vmul.f32 %v639_v25, %v1933_v29  ;;  %v744_v33 = vmul.f32 %v639_v25, %v1934_v48  ;;  %v745_v3 = vmul.f32 %v639_v25, %v1935_v2  ;;  %v746_v30 = vmul.f32 %v639_v25, %v556_v15  ;;  %v559_v15 = vpop.trf.xlu0  ;;  %v1957_v60 = vld [vmem:[#allocation20_spill] sm:$0xff]  ;;  %v1958_v36 = vld [vmem:[#allocation35_spill] sm:$0xff] }
 0x1c2   : > { %853 = vst [vmem:[%s1608_s6 + $0x2a0] sm:$0xff] %v740_v41  ;;  %854 = vst [vmem:[%s1608_s6 + $0x2a8] sm:$0xff] %v741_v26  ;;  %v1959_v27 = vld [vmem:[#allocation36_spill] sm:$0xff] }
 0x1c3   : > { %855 = vst [vmem:[%s1608_s6 + $0x2b0] sm:$0xff] %v742_v50  ;;  %856 = vst [vmem:[%s1608_s6 + $0x2b8] sm:$0xff] %v743_v32  ;;  %v644_v31 = vpop.permute.xlu1 %643  ;;  %v1960_v29 = vld [vmem:[#allocation48_spill] sm:$0xff] }
 0x1c4   : > { %857 = vst [vmem:[%s1608_s6 + $0x2c0] sm:$0xff] %v744_v33  ;;  %858 = vst [vmem:[%s1608_s6 + $0x2c8] sm:$0xff] %v745_v3  ;;  %v747_v37 = vmul.f32 %v644_v31, %v1936_v55  ;;  %v748_v6 = vmul.f32 %v644_v31, %v1937_v40  ;;  %v749_v51 = vmul.f32 %v644_v31, %v1938_v42 }
 0x1c5   : > { %859 = vst.msk [vmem:[%s1608_s6 + $0x2d0] sm:$0xff] %vm774_vm0, %v746_v30  ;;  %v750_v35 = vmul.f32 %v644_v31, %v1939_v34  ;;  %v751_v45 = vmul.f32 %v644_v31, %v1940_v44  ;;  %v752_v62 = vmul.f32 %v644_v31, %v1941_v5  ;;  %v753_v63 = vmul.f32 %v644_v31, %v557_v24  ;;  %v1956_v24 = vld [vmem:[#allocation19_spill] sm:$0xff] }
 0x1c6   : > { %860 = vst [vmem:[%s1608_s6 + $0x2d8] sm:$0xff] %v747_v37  ;;  %861 = vst [vmem:[%s1608_s6 + $0x2e0] sm:$0xff] %v748_v6 }
 0x1c7   : > { %862 = vst [vmem:[%s1608_s6 + $0x2e8] sm:$0xff] %v749_v51  ;;  %863 = vst [vmem:[%s1608_s6 + $0x2f0] sm:$0xff] %v750_v35  ;;  %v649_v1 = vpop.permute.xlu1 %648 }
 0x1c8   : > { %864 = vst [vmem:[%s1608_s6 + $0x2f8] sm:$0xff] %v751_v45  ;;  %865 = vst [vmem:[%s1608_s6 + $0x300] sm:$0xff] %v752_v62  ;;  %v754_v10 = vmul.f32 %v649_v1, %v1942_v43  ;;  %v755_v4 = vmul.f32 %v649_v1, %v1943_v11  ;;  %v756_v39 = vmul.f32 %v649_v1, %v1944_v38 }
 0x1c9   : > { %866 = vst.msk [vmem:[%s1608_s6 + $0x308] sm:$0xff] %vm774_vm0, %v753_v63  ;;  %v757_v12 = vmul.f32 %v649_v1, %v1945_v8  ;;  %v758_v49 = vmul.f32 %v649_v1, %v1946_v13  ;;  %v759_v56 = vmul.f32 %v649_v1, %v1947_v52  ;;  %v760_v14 = vmul.f32 %v649_v1, %v558_v54 }
 0x1ca   : > { %867 = vst [vmem:[%s1608_s6 + $0x310] sm:$0xff] %v754_v10  ;;  %868 = vst [vmem:[%s1608_s6 + $0x318] sm:$0xff] %v755_v4 }
 0x1cb   : > { %869 = vst [vmem:[%s1608_s6 + $0x320] sm:$0xff] %v756_v39  ;;  %870 = vst [vmem:[%s1608_s6 + $0x328] sm:$0xff] %v757_v12  ;;  %v654_v7 = vpop.permute.xlu1 %653 }
 0x1cc   : > { %871 = vst [vmem:[%s1608_s6 + $0x330] sm:$0xff] %v758_v49  ;;  %872 = vst [vmem:[%s1608_s6 + $0x338] sm:$0xff] %v759_v56  ;;  %v761_v17 = vmul.f32 %v654_v7, %v1948_v16  ;;  %v762_v61 = vmul.f32 %v654_v7, %v1949_v57  ;;  %v763_v28 = vmul.f32 %v654_v7, %v1950_v0 }
 0x1cd   : > { %873 = vst.msk [vmem:[%s1608_s6 + $0x340] sm:$0xff] %vm774_vm0, %v760_v14  ;;  %v764_v19 = vmul.f32 %v654_v7, %v1951_v18  ;;  %v765_v59 = vmul.f32 %v654_v7, %v1952_v47  ;;  %v766_v21 = vmul.f32 %v654_v7, %v1953_v20  ;;  %v767_v53 = vmul.f32 %v654_v7, %v559_v15 }
 0x1ce   : > { %874 = vst [vmem:[%s1608_s6 + $0x348] sm:$0xff] %v761_v17  ;;  %875 = vst [vmem:[%s1608_s6 + $0x350] sm:$0xff] %v762_v61 }
 0x1cf   : > { %876 = vst [vmem:[%s1608_s6 + $0x358] sm:$0xff] %v763_v28  ;;  %877 = vst [vmem:[%s1608_s6 + $0x360] sm:$0xff] %v764_v19 }
 0x1d0   : > { %878 = vst [vmem:[%s1608_s6 + $0x368] sm:$0xff] %v765_v59  ;;  %879 = vst [vmem:[%s1608_s6 + $0x370] sm:$0xff] %v766_v21 }
 0x1d1   : > { %880 = vst.msk [vmem:[%s1608_s6 + $0x378] sm:$0xff] %vm774_vm0, %v767_v53 }
 0x1de   : > { %v584_v9 = vpop.permute.xlu0 %583 }
 0x1df   : > { %v663_v23 = vmul.f32 %v584_v9, %v1954_v22  ;;  %v664_v46 = vmul.f32 %v584_v9, %v1955_v58  ;;  %v665_v25 = vmul.f32 %v584_v9, %v1956_v24  ;;  %v666_v41 = vmul.f32 %v584_v9, %v1957_v60 }
 0x1e0   : > { %v667_v26 = vmul.f32 %v584_v9, %v1958_v36  ;;  %v668_v50 = vmul.f32 %v584_v9, %v1959_v27  ;;  %v669_v32 = vmul.f32 %v584_v9, %v1960_v29 }
 0x1e1   : > { %776 = vst [vmem:[%s1608_s6 + $0x38] sm:$0xff] %v663_v23  ;;  %777 = vst [vmem:[%s1608_s6 + $0x40] sm:$0xff] %v664_v46 }
 0x1e2   : > { %778 = vst [vmem:[%s1608_s6 + $0x48] sm:$0xff] %v665_v25  ;;  %779 = vst [vmem:[%s1608_s6 + $0x50] sm:$0xff] %v666_v41 }
 0x1e3   : > { %780 = vst [vmem:[%s1608_s6 + $0x58] sm:$0xff] %v667_v26  ;;  %781 = vst [vmem:[%s1608_s6 + $0x60] sm:$0xff] %v668_v50 }
 0x1e4   : > { %782 = vst.msk [vmem:[%s1608_s6 + $0x68] sm:$0xff] %vm774_vm0, %v669_v32 }
 0x1e5 PF: > { %s15_s14 = sadd.s32 1, %s1168_s14   ;;  %s1961_s9 = smov %s1152_s10 }
 0x1e6   : > { %p12_p9 = scmp.ge.s32.totalorder %s15_s14, 5   ;;  %s1962_s10 = smov %s1156_s11 }
 0x1e7   : > { %s1963_s11 = smov %s1235_s20  ;;  %s1964_s12 = smov %s1164_s13 }
 0x1e8   : > { %s1965_s13 = smov %s1967_s16  ;;  %14 = sbr.rel (!%p12_p9) target bundleno = 4 (0x4), region = 71 }
 0x1ef   :  { %922 = vsyncpa [#allocation3], 1 }
 0x1f0   :  { %924 = vsyncpa [#allocation3 + $0x1], 1 }

</bundles_post_ra>
